<compile_context>
chip_gen: v5e
topology: v5e:2x2
jax: 0.10.0
libtpu: 0.0.40
codegen_flags: <defaults>
</compile_context>

<pallas_src>
import math

import jax
import jax.numpy as jnp
from jax import lax
from jax.experimental import pallas as pl
from jax.experimental.pallas import tpu as pltpu


def _cdiv(a, b):
    return -(-a // b)


def _choose_samples_per_block(N, L, target_lanes=2048, num_cores=2):
    """Samples per grid step.

    nb*L is always a multiple of 128 (lane-aligned blocks, unmasked stores). Blocks
    target >= target_lanes lanes to amortize the ~0.35us per-grid-step overhead, and
    when N is large enough the real samples are spread over an even number of nearly
    equal grid steps so both v7x TensorCores get balanced work.
    """
    nb_align = 128 // math.gcd(L, 128)            # smallest nb with (nb*L) % 128 == 0
    nb_max = nb_align * max(1, _cdiv(target_lanes, nb_align * L))
    if N <= nb_align:
        return nb_align                           # single (padded) aligned block
    g_target = max(num_cores, _cdiv(N, nb_max))
    g_target = num_cores * _cdiv(g_target, num_cores)   # even number of grid steps
    nb = nb_align * max(1, _cdiv(_cdiv(N, g_target), nb_align))
    return min(nb, nb_max)


def _make_kernel(C_in, C_out, K, L, dil, BL, has_downsample, op_dtype):
    shifts = tuple((K - 1 - k) * dil for k in range(K))   # tap k reads x[t - shifts[k]]

    def kernel(x_ref, w1_ref, b1_ref, w2_ref, b2_ref, o_ref):
        x = x_ref[...]                                     # (C_in, BL), MXU operand dtype

        # Hoisted causal-shift machinery, shared by conv1 and conv2 (same shift set).
        t_idx = lax.broadcasted_iota(jnp.int32, (1, BL), 1) % L
        masks = {s: t_idx >= s for s in set(shifts) if 0 < s < L}

        def causal_shift(v, s):
            # out[:, n*L + t] = v[:, n*L + t - s] if t >= s else 0 (per sample of length L).
            if s == 0:
                return v
            if s >= L:
                return jnp.zeros_like(v)
            rolled = pltpu.roll(v, shift=s, axis=1)        # XLU lane rotation
            return jnp.where(masks[s], rolled, jnp.zeros_like(rolled))

        # ---- conv1 (dilated, causal, chomped): ONE MXU dot over stacked taps ----
        x_stack = jnp.concatenate([causal_shift(x, s) for s in shifts], axis=0)
        h = jnp.dot(w1_ref[...], x_stack, preferred_element_type=jnp.float32)
        h = h + b1_ref[...]                                # (C_out, BL) f32; dropout1 = id

        # ---- conv2 (+ fused 1x1 downsample): ONE MXU dot; h never leaves vregs ----
        h_op = h.astype(op_dtype)
        pieces = [causal_shift(h_op, s) for s in shifts]
        if has_downsample:
            pieces.append(x)                               # residual 1x1 rides in the dot
        h_stack = jnp.concatenate(pieces, axis=0)
        acc = jnp.dot(w2_ref[...], h_stack, preferred_element_type=jnp.float32)
        acc = acc + b2_ref[...]                            # b2 (+ downsample bias, folded)
        if not has_downsample:
            acc = acc + x.astype(jnp.float32)              # identity residual

        o_ref[...] = acc.astype(o_ref.dtype)

    return kernel


def temporal_block_last_flat(x_flat, w1, b1, w2, b2, wd=None, bd=None, *,
                             kernel_size, dilation, seq_len, samples_per_block):
    """Layer-stacking-friendly entry: x_flat is (C_in, N_pad*L) channels-major with the
    (sample, time) axes flattened into lanes and N_pad % samples_per_block == 0.
    Returns (C_out, N_pad*L) in the same layout (no HBM transpose round trips)."""
    C_in, W = x_flat.shape
    L = seq_len
    K = kernel_size
    dil = dilation
    C_out = w1.shape[0]
    nb = samples_per_block
    BL = nb * L
    assert W % BL == 0, (W, BL)
    G = W // BL
    has_downsample = wd is not None
    if not has_downsample:
        assert C_in == C_out, "identity residual requires n_inputs == n_outputs"

    op_dtype = x_flat.dtype            # ship bf16 x for bf16 MXU operands (f32 acc)

    # Tap-fused weight stacks: single pre-concatenated refs with constant index_map.
    w1_stack = jnp.transpose(w1, (0, 2, 1)).reshape(C_out, K * C_in).astype(op_dtype)
    w2_stack = jnp.transpose(w2, (0, 2, 1)).reshape(C_out, K * C_out)
    if has_downsample:
        w2_stack = jnp.concatenate([w2_stack, wd.reshape(C_out, C_in)], axis=1)
    w2_stack = w2_stack.astype(op_dtype)
    b1c = b1.reshape(C_out, 1).astype(jnp.float32)
    b2_tot = b2 + (bd if (has_downsample and bd is not None) else 0.0)
    b2c = b2_tot.reshape(C_out, 1).astype(jnp.float32)

    kernel = _make_kernel(C_in, C_out, K, L, dil, BL, has_downsample, op_dtype)

    return pl.pallas_call(
        kernel,
        out_shape=jax.ShapeDtypeStruct((C_out, W), x_flat.dtype),
        grid_spec=pltpu.PrefetchScalarGridSpec(
            num_scalar_prefetch=0,
            grid=(G,),
            in_specs=[
                pl.BlockSpec((C_in, BL), lambda n: (0, n)),
                pl.BlockSpec(w1_stack.shape, lambda n: (0, 0)),
                pl.BlockSpec((C_out, 1), lambda n: (0, 0)),
                pl.BlockSpec(w2_stack.shape, lambda n: (0, 0)),
                pl.BlockSpec((C_out, 1), lambda n: (0, 0)),
            ],
            out_specs=pl.BlockSpec((C_out, BL), lambda n: (0, n)),
        ),
        compiler_params=pltpu.CompilerParams(dimension_semantics=("parallel",)),
    )(x_flat, w1_stack, b1c, w2_stack, b2c)


def temporal_block_last(x, w1, b1, w2, b2, wd=None, bd=None, *,
                        kernel_size, dilation, target_lanes=2048):
    """PyTorch-layout wrapper: x (N, C_in, L) -> (N, C_out, L).
    For stacked TCN layers call temporal_block_last_flat directly and keep the
    (C, N*L) layout resident across layers (transpose only at the model edges)."""
    N, C_in, L = x.shape
    C_out = w1.shape[0]

    nb = _choose_samples_per_block(N, L, target_lanes=target_lanes)
    G = _cdiv(N, nb)
    N_pad = G * nb

    xt = jnp.transpose(x, (1, 0, 2))                # (C_in, N, L) -- model-edge only
    if N_pad != N:
        xt = jnp.pad(xt, ((0, 0), (0, N_pad - N), (0, 0)))
    x_flat = xt.reshape(C_in, N_pad * L)

    y_flat = temporal_block_last_flat(
        x_flat, w1, b1, w2, b2, wd, bd,
        kernel_size=kernel_size, dilation=dilation,
        seq_len=L, samples_per_block=nb)

    y = y_flat.reshape(C_out, N_pad, L)[:, :N, :]
    return jnp.transpose(y, (1, 0, 2))              # (N, C_out, L)


def weight_norm_weight(v, g):
    # PyTorch weight_norm (dim=0): w = g * v / ||v|| with norm over dims (1, 2).
    norm = jnp.sqrt(jnp.sum(v * v, axis=(1, 2), keepdims=True))
    return g.reshape(-1, 1, 1) * v / norm


def ref_forward(x, w1, b1, w2, b2, wd, bd, K, dil):
    # Pure-JAX reference (XLA convs) for correctness checking.
    p = dil * (K - 1)
    dn = ('NCH', 'OIH', 'NCH')
    h = lax.conv_general_dilated(x, w1, window_strides=(1,), padding=[(p, p)],
                                 rhs_dilation=(dil,), dimension_numbers=dn)
    h = h + b1.reshape(1, -1, 1)
    h = h[:, :, :h.shape[2] - p]                      # chomp1
    o = lax.conv_general_dilated(h, w2, window_strides=(1,), padding=[(p, p)],
                                 rhs_dilation=(dil,), dimension_numbers=dn)
    o = o + b2.reshape(1, -1, 1)
    o = o[:, :, :o.shape[2] - p]                      # chomp2
    res = jnp.einsum('oc,ncl->nol', wd, x) + bd.reshape(1, -1, 1)
    return o + res


if __name__ == "__main__":
    # Shapes consistent with the module: n_inputs=4, n_outputs=8, kernel_size=3,
    # stride=1, dilation=2, padding=dilation*(K-1)=4, seq=16.
    N, C_in, C_out, L, K, dil = 2, 4, 8, 16, 3, 2

    key = jax.random.PRNGKey(0)
    k1, k2, k3, k4, k5, k6, kx, kx2 = jax.random.split(key, 8)

    # Deterministic synthetic init mirroring init_weights() (weight_norm v/g, w = g*v/||v||).
    v1 = 0.001 * jax.random.normal(k1, (C_out, C_in, K), jnp.float32)
    v1 = v1.at[:, 0, :].add(1.0 / K)
    g1 = jnp.sqrt(jnp.sum(v1 * v1, axis=(1, 2)))
    w1 = weight_norm_weight(v1, g1)
    b1 = 1e-6 * jax.random.normal(k2, (C_out,), jnp.float32)

    v2 = 0.001 * jax.random.normal(k3, (C_out, C_out, K), jnp.float32) + 1.0 / K
    g2 = jnp.sqrt(jnp.sum(v2 * v2, axis=(1, 2)))
    w2 = weight_norm_weight(v2, g2)
    b2 = 1e-6 * jax.random.normal(k4, (C_out,), jnp.float32)

    # downsample = Conv1d(n_inputs, n_outputs, 1): weight ~ N(0, 0.1), small bias.
    wd = 0.1 * jax.random.normal(k5, (C_out, C_in), jnp.float32)
    bd = 0.01 * jax.random.normal(k6, (C_out,), jnp.float32)

    # Case 1: tiny batch -> single lane-aligned (padded) block.
    x = jax.random.normal(kx, (N, C_in, L), jnp.float32)
    out = temporal_block_last(x, w1, b1, w2, b2, wd, bd,
                              kernel_size=K, dilation=dil)
    out = jax.block_until_ready(out)
    ref = ref_forward(x, w1, b1, w2, b2, wd, bd, K, dil)
    assert out.shape == (N, C_out, L), out.shape
    assert jnp.allclose(out, ref, atol=1e-4, rtol=1e-4), \
        float(jnp.max(jnp.abs(out - ref)))

    # Case 2: larger batch exercising balanced multi-step "parallel" grid,
    # lane-dense blocks and batch padding.
    N2 = 40
    x2 = jax.random.normal(kx2, (N2, C_in, L), jnp.float32)
    out2 = temporal_block_last(x2, w1, b1, w2, b2, wd, bd,
                               kernel_size=K, dilation=dil)
    out2 = jax.block_until_ready(out2)
    ref2 = ref_forward(x2, w1, b1, w2, b2, wd, bd, K, dil)
    assert out2.shape == (N2, C_out, L), out2.shape
    assert jnp.allclose(out2, ref2, atol=1e-4, rtol=1e-4), \
        float(jnp.max(jnp.abs(out2 - ref2)))

    print("KERNEL_OK")
</pallas_src>

<mosaic_0001>
module attributes {stable_mosaic.version = 11 : i64} {
  func.func @kernel(%arg0: i32, %arg1: memref<4x128xf32, #tpu.memory_space<vmem>>, %arg2: memref<8x12xf32, #tpu.memory_space<vmem>>, %arg3: memref<8x1xf32, #tpu.memory_space<vmem>>, %arg4: memref<8x28xf32, #tpu.memory_space<vmem>>, %arg5: memref<8x1xf32, #tpu.memory_space<vmem>>, %arg6: memref<8x128xf32, #tpu.memory_space<vmem>>) attributes {dimension_semantics = [#tpu.dimension_semantics<parallel>], iteration_bounds = array<i64: 1>, scalar_prefetch = 0 : i64, scratch_operands = 0 : i64, tpu.core_type = #tpu.core_type<tc>, window_params = [{transform_indices = @transform_0, window_bounds = array<i64: 4, 128>}, {pipeline_mode = #tpu.pipeline_mode<synchronous>, transform_indices = @transform_1, window_bounds = array<i64: 8, 12>}, {pipeline_mode = #tpu.pipeline_mode<synchronous>, transform_indices = @transform_2, window_bounds = array<i64: 8, 1>}, {pipeline_mode = #tpu.pipeline_mode<synchronous>, transform_indices = @transform_3, window_bounds = array<i64: 8, 28>}, {pipeline_mode = #tpu.pipeline_mode<synchronous>, transform_indices = @transform_4, window_bounds = array<i64: 8, 1>}, {transform_indices = @transform_5, window_bounds = array<i64: 8, 128>}]} {
    %c0 = arith.constant 0 : index
    %c0_0 = arith.constant 0 : index
    %0 = vector.load %arg1[%c0, %c0_0] : memref<4x128xf32, #tpu.memory_space<vmem>>, vector<4x128xf32>
    %1 = tpu.iota {dimensions = array<i32: 1>} : vector<1x128xi32>
    %c16_i32 = arith.constant 16 : i32
    %c0_i32 = arith.constant 0 : i32
    %2 = arith.cmpi eq, %c16_i32, %c0_i32 : i32
    %c1_i32 = arith.constant 1 : i32
    %3 = arith.select %2, %c1_i32, %c16_i32 : i32
    %4 = vector.broadcast %3 : i32 to vector<1x128xi32>
    %5 = arith.remsi %1, %4 : vector<1x128xi32>
    %c0_i32_1 = arith.constant 0 : i32
    %6 = vector.broadcast %c0_i32_1 : i32 to vector<1x128xi32>
    %7 = arith.cmpi ne, %5, %6 : vector<1x128xi32>
    %c0_i32_2 = arith.constant 0 : i32
    %8 = vector.broadcast %c0_i32_2 : i32 to vector<1x128xi32>
    %9 = arith.cmpi slt, %5, %8 : vector<1x128xi32>
    %c0_i32_3 = arith.constant 0 : i32
    %10 = arith.cmpi slt, %3, %c0_i32_3 : i32
    %11 = vector.broadcast %10 : i1 to vector<1x128xi1>
    %12 = vector.broadcast %11 : vector<1x128xi1> to vector<1x128xi1>
    %13 = arith.xori %9, %12 : vector<1x128xi1>
    %14 = arith.andi %13, %7 : vector<1x128xi1>
    %15 = vector.broadcast %3 : i32 to vector<1x128xi32>
    %16 = arith.addi %5, %15 : vector<1x128xi32>
    %17 = arith.select %14, %16, %5 : vector<1x128xi1>, vector<1x128xi32>
    %c2_i32 = arith.constant 2 : i32
    %18 = vector.broadcast %c2_i32 : i32 to vector<1x128xi32>
    %19 = arith.cmpi sge, %17, %18 : vector<1x128xi32>
    %c4_i32 = arith.constant 4 : i32
    %20 = vector.broadcast %c4_i32 : i32 to vector<1x128xi32>
    %21 = arith.cmpi sge, %17, %20 : vector<1x128xi32>
    %c4_i32_4 = arith.constant 4 : i32
    %22 = tpu.dynamic_rotate %0 by %c4_i32_4 dim 1 : vector<4x128xf32>, i32 -> vector<4x128xf32>
    %cst = arith.constant 0.000000e+00 : f32
    %23 = vector.broadcast %cst : f32 to vector<4x128xf32>
    %24 = vector.shape_cast %21 : vector<1x128xi1> to vector<1x128xi1>
    %25 = vector.broadcast %24 : vector<1x128xi1> to vector<4x128xi1>
    %26 = arith.select %25, %22, %23 : vector<4x128xi1>, vector<4x128xf32>
    %c2_i32_5 = arith.constant 2 : i32
    %27 = tpu.dynamic_rotate %0 by %c2_i32_5 dim 1 : vector<4x128xf32>, i32 -> vector<4x128xf32>
    %cst_6 = arith.constant 0.000000e+00 : f32
    %28 = vector.broadcast %cst_6 : f32 to vector<4x128xf32>
    %29 = vector.shape_cast %19 : vector<1x128xi1> to vector<1x128xi1>
    %30 = vector.broadcast %29 : vector<1x128xi1> to vector<4x128xi1>
    %31 = arith.select %30, %27, %28 : vector<4x128xi1>, vector<4x128xf32>
    %32 = tpu.concatenate %26, %31, %0 in 0 : vector<4x128xf32>, vector<4x128xf32>, vector<4x128xf32> -> vector<12x128xf32>
    %c0_7 = arith.constant 0 : index
    %c0_8 = arith.constant 0 : index
    %33 = vector.load %arg2[%c0_7, %c0_8] : memref<8x12xf32, #tpu.memory_space<vmem>>, vector<8x12xf32>
    %cst_9 = arith.constant dense<0.000000e+00> : vector<8x128xf32>
    %34 = tpu.matmul %33, %32, %cst_9 {dimension_numbers = #tpu.dot_dimension_numbers<[1], [0], [0], [1], [0, 0, 1, 1], [], []>} : vector<8x12xf32>, vector<12x128xf32>, vector<8x128xf32> -> vector<8x128xf32>
    %c0_10 = arith.constant 0 : index
    %c0_11 = arith.constant 0 : index
    %35 = vector.load %arg3[%c0_10, %c0_11] : memref<8x1xf32, #tpu.memory_space<vmem>>, vector<8x1xf32>
    %36 = vector.broadcast %35 : vector<8x1xf32> to vector<8x128xf32>
    %37 = arith.addf %34, %36 : vector<8x128xf32>
    %c4_i32_12 = arith.constant 4 : i32
    %38 = tpu.dynamic_rotate %37 by %c4_i32_12 dim 1 : vector<8x128xf32>, i32 -> vector<8x128xf32>
    %cst_13 = arith.constant 0.000000e+00 : f32
    %39 = vector.broadcast %cst_13 : f32 to vector<8x128xf32>
    %40 = vector.shape_cast %21 : vector<1x128xi1> to vector<1x128xi1>
    %41 = vector.broadcast %40 : vector<1x128xi1> to vector<8x128xi1>
    %42 = arith.select %41, %38, %39 : vector<8x128xi1>, vector<8x128xf32>
    %c2_i32_14 = arith.constant 2 : i32
    %43 = tpu.dynamic_rotate %37 by %c2_i32_14 dim 1 : vector<8x128xf32>, i32 -> vector<8x128xf32>
    %cst_15 = arith.constant 0.000000e+00 : f32
    %44 = vector.broadcast %cst_15 : f32 to vector<8x128xf32>
    %45 = vector.shape_cast %19 : vector<1x128xi1> to vector<1x128xi1>
    %46 = vector.broadcast %45 : vector<1x128xi1> to vector<8x128xi1>
    %47 = arith.select %46, %43, %44 : vector<8x128xi1>, vector<8x128xf32>
    %48 = tpu.concatenate %42, %47, %37, %0 in 0 : vector<8x128xf32>, vector<8x128xf32>, vector<8x128xf32>, vector<4x128xf32> -> vector<28x128xf32>
    %c0_16 = arith.constant 0 : index
    %c0_17 = arith.constant 0 : index
    %49 = vector.load %arg4[%c0_16, %c0_17] : memref<8x28xf32, #tpu.memory_space<vmem>>, vector<8x28xf32>
    %cst_18 = arith.constant dense<0.000000e+00> : vector<8x128xf32>
    %50 = tpu.matmul %49, %48, %cst_18 {dimension_numbers = #tpu.dot_dimension_numbers<[1], [0], [0], [1], [0, 0, 1, 1], [], []>} : vector<8x28xf32>, vector<28x128xf32>, vector<8x128xf32> -> vector<8x128xf32>
    %c0_19 = arith.constant 0 : index
    %c0_20 = arith.constant 0 : index
    %51 = vector.load %arg5[%c0_19, %c0_20] : memref<8x1xf32, #tpu.memory_space<vmem>>, vector<8x1xf32>
    %52 = vector.broadcast %51 : vector<8x1xf32> to vector<8x128xf32>
    %53 = arith.addf %50, %52 : vector<8x128xf32>
    %c0_21 = arith.constant 0 : index
    %c0_22 = arith.constant 0 : index
    %54 = vector.load %arg6[%c0_21, %c0_22] : memref<8x128xf32, #tpu.memory_space<vmem>>, vector<8x128xf32>
    tpu.vector_store %arg6[%c0_21, %c0_22], %53 {strides = array<i32>} : memref<8x128xf32, #tpu.memory_space<vmem>>, vector<8x128xf32>,
    return
  }
  func.func @transform_0(%arg0: i32) -> (i32, i32) {
    %c0_i32 = arith.constant 0 : i32
    %c0_i32_0 = arith.constant 0 : i32
    return %c0_i32, %arg0 : i32, i32
  }
  func.func @transform_1(%arg0: i32) -> (i32, i32) {
    %c0_i32 = arith.constant 0 : i32
    %c0_i32_0 = arith.constant 0 : i32
    %c0_i32_1 = arith.constant 0 : i32
    return %c0_i32, %c0_i32_0 : i32, i32
  }
  func.func @transform_2(%arg0: i32) -> (i32, i32) {
    %c0_i32 = arith.constant 0 : i32
    %c0_i32_0 = arith.constant 0 : i32
    %c0_i32_1 = arith.constant 0 : i32
    return %c0_i32, %c0_i32_0 : i32, i32
  }
  func.func @transform_3(%arg0: i32) -> (i32, i32) {
    %c0_i32 = arith.constant 0 : i32
    %c0_i32_0 = arith.constant 0 : i32
    %c0_i32_1 = arith.constant 0 : i32
    return %c0_i32, %c0_i32_0 : i32, i32
  }
  func.func @transform_4(%arg0: i32) -> (i32, i32) {
    %c0_i32 = arith.constant 0 : i32
    %c0_i32_0 = arith.constant 0 : i32
    %c0_i32_1 = arith.constant 0 : i32
    return %c0_i32, %c0_i32_0 : i32, i32
  }
  func.func @transform_5(%arg0: i32) -> (i32, i32) {
    %c0_i32 = arith.constant 0 : i32
    %c0_i32_0 = arith.constant 0 : i32
    return %c0_i32, %arg0 : i32, i32
  }
}

</mosaic_0001>

<bundles_post_ra>
// kernel: tpu_custom_call.1
= control target key start
LH: loop header
LB: loop body
LE: loop exit
PB: predicated region body
PF: predicated region fallthrough
CT: control target
= control target key end

     0   :  { %10 = vsyncpa [#allocation3], 0  ;;  %s296_s0 = inlined_call_operand.hbm [shape: f32[4,128], index: 0, kind: input, shape index: {}]   ;;  %s297_s1 = inlined_call_operand.vmem [shape: f32[8,12], index: 1, kind: input, shape index: {}]   ;;  %s298_s2 = inlined_call_operand.vmem [shape: f32[8,1], index: 2, kind: input, shape index: {}]   ;;  %s299_s3 = inlined_call_operand.vmem [shape: f32[8,28], index: 3, kind: input, shape index: {}]   ;;  %s300_s4 = inlined_call_operand.vmem [shape: f32[8,1], index: 4, kind: input, shape index: {}]   ;;  %s301_s5 = inlined_call_operand.hbm [shape: f32[8,128], index: 5, kind: output, shape index: {}]  }
   0x1   :  { %11 = vsyncpa [#allocation4], 0  ;;  %s17_s20 = sshll.u32 %s296_s0, 4  ;;  %s222_s21 = smov [#allocation2]   ;;  %s18_s20 = int_to_ptr.hbm [resolvable:$true] %s17_s20 }
   0x2   :  { %s19_s22 = sshll.u32 %s222_s21, 4  ;;  %s20_s22 = int_to_ptr.vmem [resolvable:$true] %s19_s22 }
   0x3   :  { %22 = dma.hbm_to_vmem [thread:$0]  %s18_s20, 64, %s20_s22, [#allocation3]  }
   0x4   :  { %218 = dma.done.wait [#allocation3], 64  }
   0x5   :  { %219 = vsyncadd [#allocation3], 4294967232  ;;  %v35_v0 = vld [vmem:[#allocation2] sm:$0xf]  ;;  %s223_s23 = smov 2   ;;  %s224_s24 = smov 4   ;;  %v36_v3 = vlaneseq }
   0x6   :  { %57 = vrot.lane.b32.xlu0 %v35_v0, %s223_s23  ;;  %vm65_vm0 = vcmask 1043456   ;;  %v68_v1 = vld [vmem:[%s298_s2] sm:$0xff]  ;;  %v225_v2 = vmov 0   ;;  %vm74_vm3 = vcmask 97280   ;;  %vm114_vm4 = vcmask 228352   ;;  %s226_s30 = smov [#allocation5]  }
   0x7   :  { %156 = vmatpush.msk.msra.mxu0 %vm65_vm0, %v35_v0  ;;  %158 = vmatpush.msk.msra.mxu1 %vm65_vm0, %v35_v0  ;;  %v37_v4 = vand.u32 127, %v36_v3  ;;  %v67_v13 = vld [vmem:[%s297_s1] sm:$0xff]  ;;  %s144_s6 = sshll.u32 %s226_s30, 4  ;;  %s146_s8 = sshll.u32 %s301_s5, 4  ;;  %s145_s6 = int_to_ptr.vmem [resolvable:$true] %s144_s6  ;;  %s147_s8 = int_to_ptr.hbm [resolvable:$true] %s146_s8 }
   0x8   :  { %167 = vset.pattern.permute.xlu1 %v225_v2  ;;  %168 = vset.pattern.permute.xlu2 %v225_v2  ;;  %v108_v18 = vld [vmem:[%s300_s4] sm:$0xff] }
   0x9   :  { %71 = vperm.xlu1 %167, %v68_v1   ;;  %169 = vset.pattern.permute.xlu0 %v225_v2  ;;  %v42_v5 = vand.u32 15, %v37_v4  ;;  %v107_v20 = vld [vmem:[%s299_s3] sm:$0xff] }
   0xb   :  { %vm266_vm1 = vcmp.ge.s32.totalorder %v42_v5, 2  ;;  %vm272_vm2 = vcmp.ge.s32.totalorder %v42_v5, 4 }
   0xe   :  { %52 = vrot.lane.b32.xlu0 %v35_v0, %s224_s24 }
  0x78   :  { %v58_v6 = vpop.permute.xlu0 %57 }
  0x79   :  { %v61_v8 = vsel %vm266_vm1, %v58_v6, 0.0 }
  0x7a   :  { %v63_v10 = vrot.slane %v61_v8, 4 }
  0x7b   :  { %v72_v15 = vpop.permute.xlu1 %71 }
  0x80   :  { %v53_v11 = vpop.permute.xlu0 %52 }
  0x81   :  { %v56_v12 = vsel %vm272_vm2, %v53_v11, 0.0 }
  0x82   :  { %v66_v14 = vsel %vm65_vm0, %v56_v12, %v63_v10 }
  0x83   :  { %96 = vmatpush.msra.mxu0 %v66_v14 }
  0x84   :  { %157 = vmatmul.msk.f32.vlgmr.msra.gmra.mxu0 %vm74_vm3, %v67_v13 }
 0x101   :  { %v98_v16 = vpop.f32.mrf.mxu0 }
 0x102   :  { %v99_v17 = vadd.f32 %v98_v16, %v72_v15 }
 0x104   :  { %101 = vrot.lane.b32.xlu2 %v99_v17, %s224_s24  ;;  %104 = vrot.lane.b32.xlu1 %v99_v17, %s223_s23 }
 0x105   :  { %131 = vmatpush.msra.mxu1 %v99_v17 }
 0x10c   :  { %111 = vperm.xlu2 %168, %v108_v18  }
 0x15e   :  { %v102_v21 = vpop.permute.xlu2 %101 }
 0x166   :  { %v112_v22 = vpop.permute.xlu2 %111 }
 0x176   :  { %v105_v19 = vpop.permute.xlu1 %104 }
 0x177   :  { %159 = vmatpush.msk.msra.mxu1 %vm266_vm1, %v105_v19 }
 0x179   :  { %160 = vmatpush.msk.msra.mxu1 %vm272_vm2, %v102_v21 }
 0x17a   :  { %161 = vmatmul.msk.f32.vlgmr.msra.gmra.mxu1 %vm114_vm4, %v107_v20 }
 0x1f7   :  { %v135_v23 = vpop.f32.mrf.mxu1 }
 0x1f8   :  { %v136_v24 = vadd.f32 %v135_v23, %v112_v22 }
 0x1fa   :  { %138 = vst [vmem:[#allocation5] sm:$0xff] %v136_v24 }
 0x1fb   :  { %149 = dma.vmem_to_hbm [thread:$0]  %s145_s6, 128, %s147_s8, [#allocation4]  }
 0x1fc   :  { %220 = dma.done.wait [#allocation4], 128  }
 0x1fd   :  { %221 = vsyncadd [#allocation4], 4294967168 }
 0x1fe   :  { %154 = vsyncpa [#allocation3], 1 }
 0x1ff   :  { %155 = vsyncpa [#allocation4], 1 }

</bundles_post_ra>
